<compile_context>
chip_gen: v6e
topology: v6e:2x2x1
jax: 0.10.0
libtpu: 0.0.40
codegen_flags: <defaults>
</compile_context>

<pallas_src>
import functools

import jax
import jax.numpy as jnp
from jax.experimental import pallas as pl
from jax.experimental.pallas import tpu as pltpu


def _cosine_loss_kernel(a_ref, b_ref, y_ref, o_ref, *,
                        margin, n_rows, block_rows, chunk_rows, ragged):
    """One grid step: (block_rows, D) rows of a/b -> lane-dense (1, 128) partial sum."""
    num_chunks = block_rows // chunk_rows
    eps2 = jnp.float32(1e-8) * jnp.float32(1e-8)   # PyTorch CosineSimilarity eps=1e-8
    m = jnp.float32(margin)
    block_row0 = pl.program_id(0) * block_rows

    def chunk_loss_sum(c, mask_rows):
        if num_chunks == 1:
            a = a_ref[...].astype(jnp.float32)
            b = b_ref[...].astype(jnp.float32)
            y = y_ref[...]
            row0 = block_row0
        else:
            start = pl.multiple_of(c * chunk_rows, chunk_rows)
            a = a_ref[pl.ds(start, chunk_rows), :].astype(jnp.float32)
            b = b_ref[pl.ds(start, chunk_rows), :].astype(jnp.float32)
            y = y_ref[pl.ds(start, chunk_rows), :]
            row0 = block_row0 + start
        dot = jnp.sum(a * b, axis=1, keepdims=True)            # (chunk, 1)
        na2 = jnp.sum(a * a, axis=1, keepdims=True)            # (chunk, 1)
        nb2 = jnp.sum(b * b, axis=1, keepdims=True)            # (chunk, 1)
        # max(||a||*||b||, eps) == sqrt(max(||a||^2 ||b||^2, eps^2)); one EUP rsqrt.
        cos = dot * jax.lax.rsqrt(jnp.maximum(na2 * nb2, eps2))
        loss = jnp.where(y == 1.0, 1.0 - cos, jnp.maximum(cos - m, 0.0))
        if mask_rows:
            # Only traced for the ragged last block: zero rows past the true N.
            row_ids = row0 + jax.lax.broadcasted_iota(jnp.int32, loss.shape, 0)
            loss = jnp.where(row_ids < n_rows, loss, 0.0)
        return jnp.sum(loss, axis=0, keepdims=True)            # (1, 1)

    def block_sum(mask_rows):
        if num_chunks == 1:
            return chunk_loss_sum(0, mask_rows)
        return jax.lax.fori_loop(
            0, num_chunks,
            lambda c, acc: acc + chunk_loss_sum(c, mask_rows),
            jnp.zeros((1, 1), jnp.float32))

    if not ragged:
        # N % block_rows == 0: masking compiled out entirely.
        o_ref[...] = jnp.broadcast_to(block_sum(False), o_ref.shape)
    else:
        is_last = pl.program_id(0) == pl.num_programs(0) - 1

        @pl.when(is_last)
        def _():
            o_ref[...] = jnp.broadcast_to(block_sum(True), o_ref.shape)

        @pl.when(jnp.logical_not(is_last))
        def _():
            o_ref[...] = jnp.broadcast_to(block_sum(False), o_ref.shape)


def _vmem_capacity_bytes():
    try:
        info = pltpu.get_tpu_info()
        cap = getattr(info, "vmem_capacity_bytes", None)
        if cap:
            return int(cap)
    except Exception:
        pass
    return 64 * 1024 * 1024   # conservative fallback: assume v7x-style per-TC VMEM


def _vmem_budget():
    """(target native bytes per input block, vmem_limit_bytes) per TPU generation."""
    cap = _vmem_capacity_bytes()
    if cap >= 96 * 1024 * 1024:
        # v5e / v6e: 128 MiB physical VMEM -> big tiles, raised scoped limit.
        return 6 * 1024 * 1024, 64 * 1024 * 1024
    # v7x: 64 MiB per TC -> smaller tiles; 2 inputs x 2 buffers + chunked f32
    # temps stays well under a 40 MiB scoped limit.
    return 3 * 1024 * 1024, 40 * 1024 * 1024


def _choose_block_rows(n, d, itemsize, target_bytes):
    tn = target_bytes // max(1, d * itemsize)
    tn = max(32, (tn // 32) * 32)   # 32-row alignment covers f32/bf16/int8 row packing
    if tn >= n:
        # A single block would idle one TensorCore on v7x; for non-trivial N
        # force two balanced blocks on the "parallel" batch axis.
        if n >= 256:
            half = (((n + 1) // 2) + 31) // 32 * 32
            return int(half)
        return int(n)
    return int(tn)


def _choose_chunk_rows(tn, d):
    # Bound the live f32 footprint of the in-kernel upcasts/products to about
    # 1 MiB per (chunk, D) temp so large native tiles never spill VMEM.
    c = (1 * 1024 * 1024) // max(1, d * 4)
    c = max(8, (c // 8) * 8)
    if c >= tn:
        return int(tn)
    while c > 8 and tn % c != 0:
        c -= 8
    if tn % c != 0:
        c = tn
    return int(c)


def cosine_loss(a, b, y, margin=0.5, *, block_rows=None, chunk_rows=None):
    """Pallas TPU implementation of CosineLoss.forward(a, b, y).

    a, b may be any float dtype (e.g. bf16); they are streamed in their native
    dtype and upcast to f32 chunk-by-chunk inside the kernel.
    """
    n, d = a.shape
    y2d = y.astype(jnp.float32).reshape(n, 1)

    target_bytes, vmem_limit = _vmem_budget()
    if block_rows is None:
        tn = _choose_block_rows(n, d, a.dtype.itemsize, target_bytes)
    else:
        tn = min(int(block_rows), n)
        if tn < n:
            # 16-row granularity keeps bf16 sublane packing clean.
            tn = min(max(16, (tn // 16) * 16), n)

    if chunk_rows is not None:
        ck = min(int(chunk_rows), tn)
        if ck < tn:
            ck = max(8, (ck // 8) * 8)
        if tn % ck != 0:
            ck = _choose_chunk_rows(tn, d)
    else:
        ck = _choose_chunk_rows(tn, d)

    num_blocks = pl.cdiv(n, tn)
    ragged = (n % tn) != 0

    # TODO(synk): for very wide D (a single (8, D) row-chunk over the VMEM budget),
    # add an inner "arbitrary" grid axis over D with per-row partial accumulators.
    # TODO(synk): pass n_rows via scalar prefetch to avoid recompiling per batch size.
    kernel = functools.partial(
        _cosine_loss_kernel,
        margin=float(margin), n_rows=n, block_rows=tn, chunk_rows=ck, ragged=ragged)

    partials = pl.pallas_call(
        kernel,
        out_shape=jax.ShapeDtypeStruct((num_blocks, 128), jnp.float32),
        grid=(num_blocks,),
        in_specs=[
            pl.BlockSpec((tn, d), lambda i: (i, 0)),
            pl.BlockSpec((tn, d), lambda i: (i, 0)),
            pl.BlockSpec((tn, 1), lambda i: (i, 0)),
        ],
        out_specs=pl.BlockSpec((1, 128), lambda i: (i, 0)),
        compiler_params=pltpu.CompilerParams(
            dimension_semantics=("parallel",),   # independent per-block partials
            vmem_limit_bytes=vmem_limit,
        ),
    )(a, b, y2d)

    return jnp.sum(partials[:, 0]) / jnp.float32(n)


def _reference(a, b, y, margin=0.5):
    a = a.astype(jnp.float32)
    b = b.astype(jnp.float32)
    dot = jnp.sum(a * b, axis=1)
    na = jnp.linalg.norm(a, axis=1)
    nb = jnp.linalg.norm(b, axis=1)
    cos = dot / jnp.maximum(na * nb, 1e-8)
    loss = jnp.where(y == 1, 1.0 - cos, jnp.maximum(cos - margin, 0.0))
    return jnp.mean(loss)


if __name__ == "__main__":
    key = jax.random.PRNGKey(0)
    ka, kb, ky = jax.random.split(key, 3)
    margin = 0.5

    # Case 1: small, single-block path (module-scale shapes).
    N, D = 8, 32
    a = jax.random.normal(ka, (N, D), dtype=jnp.float32)
    b = jax.random.normal(kb, (N, D), dtype=jnp.float32)
    y = jax.random.bernoulli(ky, 0.5, (N,)).astype(jnp.int32)   # labels in {0, 1}

    out = jax.block_until_ready(cosine_loss(a, b, y, margin))
    ref = _reference(a, b, y, margin)
    assert jnp.allclose(out, ref, atol=1e-5, rtol=1e-5), (out, ref)

    # Case 2: multi-block grid with a ragged last block (tiling + masking via pl.when).
    N2, D2 = 40, 32
    a2 = jax.random.normal(ka, (N2, D2), dtype=jnp.float32)
    b2 = jax.random.normal(kb, (N2, D2), dtype=jnp.float32)
    y2 = jax.random.bernoulli(ky, 0.5, (N2,)).astype(jnp.int32)
    out2 = jax.block_until_ready(cosine_loss(a2, b2, y2, margin, block_rows=16))
    ref2 = _reference(a2, b2, y2, margin)
    assert jnp.allclose(out2, ref2, atol=1e-5, rtol=1e-5), (out2, ref2)

    # Case 3: bf16 inputs streamed natively, upcast inside the kernel.
    a3 = a.astype(jnp.bfloat16)
    b3 = b.astype(jnp.bfloat16)
    out3 = jax.block_until_ready(cosine_loss(a3, b3, y, margin))
    ref3 = _reference(a3.astype(jnp.float32), b3.astype(jnp.float32), y, margin)
    assert jnp.allclose(out3, ref3, atol=1e-5, rtol=1e-5), (out3, ref3)

    # Case 4: exercises the chunked fori_loop reduction (4 chunks/block, 8 blocks).
    N4, D4 = 512, 128
    a4 = jax.random.normal(ka, (N4, D4), dtype=jnp.float32)
    b4 = jax.random.normal(kb, (N4, D4), dtype=jnp.float32)
    y4 = jax.random.bernoulli(ky, 0.5, (N4,)).astype(jnp.int32)
    out4 = jax.block_until_ready(cosine_loss(a4, b4, y4, margin,
                                             block_rows=64, chunk_rows=16))
    ref4 = _reference(a4, b4, y4, margin)
    assert jnp.allclose(out4, ref4, atol=1e-5, rtol=1e-5), (out4, ref4)

    # Case 5: auto path that force-splits into 2 balanced blocks (v7x dual-TC path).
    N5, D5 = 384, 128
    a5 = jax.random.normal(ka, (N5, D5), dtype=jnp.float32)
    b5 = jax.random.normal(kb, (N5, D5), dtype=jnp.float32)
    y5 = jax.random.bernoulli(ky, 0.5, (N5,)).astype(jnp.int32)
    out5 = jax.block_until_ready(cosine_loss(a5, b5, y5, margin))
    ref5 = _reference(a5, b5, y5, margin)
    assert jnp.allclose(out5, ref5, atol=1e-5, rtol=1e-5), (out5, ref5)

    print("KERNEL_OK")
</pallas_src>

<mosaic_0001>
module attributes {stable_mosaic.version = 11 : i64} {
  func.func @_cosine_loss_kernel(%arg0: i32, %arg1: memref<8x32xf32, #tpu.memory_space<vmem>>, %arg2: memref<8x32xf32, #tpu.memory_space<vmem>>, %arg3: memref<8x1xf32, #tpu.memory_space<vmem>>, %arg4: memref<1x128xf32, #tpu.memory_space<vmem>>) attributes {dimension_semantics = [#tpu.dimension_semantics<parallel>], iteration_bounds = array<i64: 1>, scalar_prefetch = 0 : i64, scratch_operands = 0 : i64, tpu.core_type = #tpu.core_type<tc>, window_params = [{transform_indices = @transform_0, window_bounds = array<i64: 8, 32>}, {transform_indices = @transform_1, window_bounds = array<i64: 8, 32>}, {transform_indices = @transform_2, window_bounds = array<i64: 8, 1>}, {transform_indices = @transform_3, window_bounds = array<i64: 1, 128>}]} {
    %cst = arith.constant 9.99999993E-9 : f32
    %cst_0 = arith.constant 9.99999993E-9 : f32
    %0 = arith.mulf %cst, %cst_0 : f32
    %c0 = arith.constant 0 : index
    %c0_1 = arith.constant 0 : index
    %1 = vector.load %arg1[%c0, %c0_1] : memref<8x32xf32, #tpu.memory_space<vmem>>, vector<8x32xf32>
    %c0_2 = arith.constant 0 : index
    %c0_3 = arith.constant 0 : index
    %2 = vector.load %arg2[%c0_2, %c0_3] : memref<8x32xf32, #tpu.memory_space<vmem>>, vector<8x32xf32>
    %c0_4 = arith.constant 0 : index
    %c0_5 = arith.constant 0 : index
    %3 = vector.load %arg3[%c0_4, %c0_5] : memref<8x1xf32, #tpu.memory_space<vmem>>, vector<8x1xf32>
    %4 = arith.mulf %1, %2 : vector<8x32xf32>
    %cst_6 = arith.constant dense<0.000000e+00> : vector<8xf32>
    %5 = vector.multi_reduction <add>, %4, %cst_6 [1] : vector<8x32xf32> to vector<8xf32>
    %6 = vector.shape_cast %5 : vector<8xf32> to vector<8x1xf32>
    %7 = arith.mulf %1, %1 : vector<8x32xf32>
    %cst_7 = arith.constant dense<0.000000e+00> : vector<8xf32>
    %8 = vector.multi_reduction <add>, %7, %cst_7 [1] : vector<8x32xf32> to vector<8xf32>
    %9 = vector.shape_cast %8 : vector<8xf32> to vector<8x1xf32>
    %10 = arith.mulf %2, %2 : vector<8x32xf32>
    %cst_8 = arith.constant dense<0.000000e+00> : vector<8xf32>
    %11 = vector.multi_reduction <add>, %10, %cst_8 [1] : vector<8x32xf32> to vector<8xf32>
    %12 = vector.shape_cast %11 : vector<8xf32> to vector<8x1xf32>
    %13 = arith.mulf %9, %12 : vector<8x1xf32>
    %14 = vector.broadcast %0 : f32 to vector<8x1xf32>
    %15 = arith.maximumf %13, %14 : vector<8x1xf32>
    %16 = math.rsqrt %15 : vector<8x1xf32>
    %17 = arith.mulf %6, %16 : vector<8x1xf32>
    %cst_9 = arith.constant 1.000000e+00 : f32
    %18 = vector.broadcast %cst_9 : f32 to vector<8x1xf32>
    %19 = arith.cmpf oeq, %3, %18 : vector<8x1xf32>
    %cst_10 = arith.constant 1.000000e+00 : f32
    %20 = vector.broadcast %cst_10 : f32 to vector<8x1xf32>
    %21 = arith.subf %20, %17 : vector<8x1xf32>
    %cst_11 = arith.constant 5.000000e-01 : f32
    %22 = vector.broadcast %cst_11 : f32 to vector<8x1xf32>
    %23 = arith.subf %17, %22 : vector<8x1xf32>
    %cst_12 = arith.constant 0.000000e+00 : f32
    %24 = vector.broadcast %cst_12 : f32 to vector<8x1xf32>
    %25 = arith.maximumf %23, %24 : vector<8x1xf32>
    %26 = arith.select %19, %21, %25 : vector<8x1xi1>, vector<8x1xf32>
    %cst_13 = arith.constant dense<0.000000e+00> : vector<1xf32>
    %27 = vector.multi_reduction <add>, %26, %cst_13 [0] : vector<8x1xf32> to vector<1xf32>
    %28 = vector.shape_cast %27 : vector<1xf32> to vector<1x1xf32>
    %29 = vector.shape_cast %28 : vector<1x1xf32> to vector<1x1xf32>
    %30 = vector.broadcast %29 : vector<1x1xf32> to vector<1x128xf32>
    %c0_14 = arith.constant 0 : index
    %c0_15 = arith.constant 0 : index
    %31 = vector.load %arg4[%c0_14, %c0_15] : memref<1x128xf32, #tpu.memory_space<vmem>>, vector<1x128xf32>
    tpu.vector_store %arg4[%c0_14, %c0_15], %30 {strides = array<i32>} : memref<1x128xf32, #tpu.memory_space<vmem>>, vector<1x128xf32>,
    return
  }
  func.func @transform_0(%arg0: i32) -> (i32, i32) {
    %c0_i32 = arith.constant 0 : i32
    %c0_i32_0 = arith.constant 0 : i32
    return %arg0, %c0_i32 : i32, i32
  }
  func.func @transform_1(%arg0: i32) -> (i32, i32) {
    %c0_i32 = arith.constant 0 : i32
    %c0_i32_0 = arith.constant 0 : i32
    return %arg0, %c0_i32 : i32, i32
  }
  func.func @transform_2(%arg0: i32) -> (i32, i32) {
    %c0_i32 = arith.constant 0 : i32
    %c0_i32_0 = arith.constant 0 : i32
    return %arg0, %c0_i32 : i32, i32
  }
  func.func @transform_3(%arg0: i32) -> (i32, i32) {
    %c0_i32 = arith.constant 0 : i32
    %c0_i32_0 = arith.constant 0 : i32
    return %arg0, %c0_i32 : i32, i32
  }
}

</mosaic_0001>

<bundles_post_ra>
// kernel: tpu_custom_call.1
= control target key start
LH: loop header
LB: loop body
LE: loop exit
PB: predicated region body
PF: predicated region fallthrough
CT: control target
= control target key end

     0   :  { %8 = vsyncpa [#allocation3], 0  ;;  %s168_s0 = inlined_call_operand.vmem [shape: f32[8,32], index: 0, kind: input, shape index: {}]   ;;  %s169_s1 = inlined_call_operand.hbm [shape: f32[8,32], index: 1, kind: input, shape index: {}]   ;;  %s170_s2 = inlined_call_operand.vmem [shape: f32[8,1], index: 2, kind: input, shape index: {}]   ;;  %s171_s3 = inlined_call_operand.hbm [shape: f32[1,128], index: 3, kind: output, shape index: {}]  }
   0x1   :  { %9 = vsyncpa [#allocation4], 0  ;;  %s133_s12 = smov [#allocation2]  }
   0x2   :  { %s18_s13 = sshll.u32 %s133_s12, 4  ;;  %s19_s13 = int_to_ptr.vmem [resolvable:$true] %s18_s13 }
   0x3   :  { %s97_s14 = scalar_lea.vmem %s19_s13, 128  ;;  %p102_p1 = scmp.lt.s32.totalorder %s19_s13, %s19_s13 }
   0x4   :  { %p98_p0 = scmp.ne.s32.totalorder %s19_s13, %s97_s14  ;;  %p103_p2 = scmp.lt.s32.totalorder %s97_s14, %s97_s14 }
   0x6   :  { %p104_p3 = por %p103_p2, %p102_p1 }
   0x8   :  { %p105_p4 = pnand %p104_p3, %p98_p0 }
   0xa   :  { %108 = shalt.err (!%p105_p4)
}
   0xb   :  { %21 = dma.hbm_to_vmem [thread:$0]  %s169_s1, 128, %s19_s13, [#allocation3]  }
   0xc   :  { %129 = dma.done.wait [#allocation3], 128  }
   0xd   :  { %130 = vsyncadd [#allocation3], 4294967168  ;;  %v27_v0 = vld [vmem:[%s168_s0] sm:$0xff]  ;;  %vm31_vm0 = vcmask 261120   ;;  %v134_v8 = vmov 0   ;;  %vm52_vm2 = vcmask 7168  }
   0xe   :  { %v28_v1 = vld [vmem:[#allocation2] sm:$0xff]  ;;  %v35_v2 = vmul.f32 %v27_v0, %v27_v0  ;;  %85 = vset.pattern.permute.xlu1 %v134_v8  ;;  %86 = vset.pattern.permute.xlu0 %v134_v8  ;;  %s135_s19 = smov [#allocation5]  }
   0xf   :  { %v39_v3 = vmul.f32 %v28_v1, %v28_v1  ;;  %v30_v4 = vmul.f32 %v28_v1, %v27_v0  ;;  %v29_v15 = vld [vmem:[%s170_s2] sm:$0xff]  ;;  %s72_s20 = sshll.u32 %s135_s19, 4  ;;  %s73_s20 = int_to_ptr.vmem [resolvable:$true] %s72_s20 }
  0x10   :  { %v36_v5 = vsel %vm31_vm0, %v35_v2, 0.0  ;;  %vm47_vm1 = vcmp.eq.f32.partialorder %v29_v15, 1.0  ;;  %s109_s2 = scalar_lea.vmem %s73_s20, 16  ;;  %s113_s21 = scalar_lea.vmem %s73_s20, 32 }
  0x11   :  { %v32_v6 = vsel %vm31_vm0, %v30_v4, 0.0  ;;  %37 = vadd.xlane.f32.xlu0 %v36_v5  ;;  %v40_v7 = vsel %vm31_vm0, %v39_v3, 0.0  ;;  %p110_p5 = scmp.ne.s32.totalorder %s73_s20, %s109_s2  ;;  %p114_p6 = scmp.lt.s32.totalorder %s73_s20, %s73_s20 }
  0x12   :  { %33 = vadd.xlane.f32.xlu1 %v32_v6  ;;  %p115_p7 = scmp.lt.s32.totalorder %s113_s21, %s109_s2 }
  0x14   :  { %p116_p8 = por %p115_p7, %p114_p6 }
  0x15   :  { %41 = vadd.xlane.f32.xlu0 %v40_v7 }
  0x16   :  { %p117_p9 = pnand %p116_p8, %p110_p5 }
  0x9a   :  { %v38_v9 = vpop.xlane.xlu0 %37 }
  0x9b   :  { %v34_v13 = vpop.xlane.xlu1 %33 }
  0x9e   :  { %v42_v10 = vpop.xlane.xlu0 %41 }
  0x9f   :  { %v43_v11 = vmul.f32 %v42_v10, %v38_v9 }
  0xa1   :  { %v44_v12 = vmax.f32 %v43_v11, 1e-16 }
  0xa3   :  { %87 = vrsqrt.f32 %v44_v12 }
  0xb0   :  { %v88_v14 = vpop.eup %87 }
  0xb1   :  { %v46_v16 = vmul.f32 %v88_v14, %v34_v13 }
  0xb3   :  { %v81_v17 = vadd.f32 -0.5, %v46_v16  ;;  %v48_v18 = vsub.f32 1.0, %v46_v16 }
  0xb5   :  { %v50_v19 = vmax.f32 %v81_v17, 0.0 }
  0xb7   :  { %v51_v20 = vsel %vm47_vm1, %v48_v18, %v50_v19 }
  0xb8   :  { %v53_v21 = vsel %vm52_vm2, %v51_v20, 0.0 }
  0xb9   :  { %v54_v22 = vrot.slane %v53_v21, 4 }
  0xbb   :  { %v55_v23 = vadd.f32 %v54_v22, %v53_v21 }
  0xbd   :  { %v56_v24 = vrot.slane %v55_v23, 2 }
  0xbf   :  { %v57_v25 = vadd.f32 %v56_v24, %v55_v23 }
  0xc1   :  { %v58_v26 = vrot.slane %v57_v25, 1 }
  0xc3   :  { %v59_v27 = vadd.f32 %v58_v26, %v57_v25 }
  0xc5   :  { %62 = vperm.xlu1 %85, %v59_v27  }
 0x140   :  { %v63_v28 = vpop.permute.xlu1 %62 }
 0x141   :  { %65 = vst [vmem:[#allocation5] sm:$0x1] %v63_v28 }
 0x142   :  { %120 = shalt.err (!%p117_p9)
}
 0x143   :  { %75 = dma.vmem_to_hbm [thread:$0]  %s73_s20, 16, %s171_s3, [#allocation4]  }
 0x144   :  { %131 = dma.done.wait [#allocation4], 16  }
 0x145   :  { %132 = vsyncadd [#allocation4], 4294967280 }
 0x146   :  { %79 = vsyncpa [#allocation3], 1 }
 0x147   :  { %80 = vsyncpa [#allocation4], 1 }

</bundles_post_ra>
